<compile_context>
chip_gen: v7x
topology: tpu7x:2x2x1
jax: 0.10.0
libtpu: 0.0.40
codegen_flags: <defaults>
</compile_context>

<pallas_src>
import math

import jax
import jax.numpy as jnp
from jax.experimental import pallas as pl
from jax.experimental.pallas import tpu as pltpu


def make_positional_encoding(d_model: int, max_len: int = 5000,
                             dtype=jnp.float32) -> jnp.ndarray:
    """Sinusoidal table identical to the PyTorch __init__, stored as a dense
    2-D [max_len, d_model] buffer in the activation dtype (construction-time
    cast -> zero per-call glue)."""
    position = jnp.arange(0, max_len, dtype=jnp.float32)[:, None]          # [max_len, 1]
    div_term = jnp.exp(
        jnp.arange(0, d_model, 2, dtype=jnp.float32) * (-math.log(10000.0) / d_model)
    )                                                                       # [d_model/2]
    angles = position * div_term                                            # [max_len, d_model/2]
    pe = jnp.zeros((max_len, d_model), dtype=jnp.float32)
    pe = pe.at[:, 0::2].set(jnp.sin(angles))
    pe = pe.at[:, 1::2].set(jnp.cos(angles))
    return pe.astype(dtype)                                                 # [max_len, d_model]


def _add_pe_kernel(x_ref, pe_ref, o_ref):
    # x_ref:  (ts, B, D) block in VMEM
    # pe_ref: (ts, D)    block in VMEM; broadcast over the batch axis
    o_ref[...] = x_ref[...] + pe_ref[...][:, None, :]


def _round_up(x: int, m: int) -> int:
    return ((x + m - 1) // m) * m


def _choose_tile_s(S: int, B: int, D: int, dtype,
                   target_bytes: int = 4 << 20) -> int:
    """Seq-tile size: multiple of 8, ~target_bytes of *padded* VMEM per x block,
    and at least 2 seq tiles when S >= 16 (so v7x's 2nd TensorCore gets work)."""
    itemsize = jnp.dtype(dtype).itemsize
    sublane = 8 * (4 // itemsize)                      # 8 f32, 16 bf16/f16, 32 int8
    padded_row = _round_up(B, sublane) * _round_up(D, 128) * itemsize
    rows = max(8, ((target_bytes // padded_row) // 8) * 8)
    if S >= 16:
        rows = min(rows, _round_up(pl.cdiv(S, 2), 8))  # guarantee >= 2 seq tiles
    return min(rows, max(8, (S // 8) * 8))             # never exceed S (for S >= 8)


def positional_encoding_forward(x: jnp.ndarray, pe2d: jnp.ndarray,
                                tile_s: int | None = None,
                                donate_x: bool = False) -> jnp.ndarray:
    """x: [S, B, D];  pe2d: [max_len, D] (same dtype as x).  Returns x + pe[:S]."""
    S, B, D = x.shape
    assert pe2d.ndim == 2 and pe2d.shape[1] == D and pe2d.shape[0] >= S

    if pe2d.dtype != x.dtype:
        # Fallback only; construct pe with the activation dtype to avoid this pass.
        pe2d = pe2d.astype(x.dtype)

    if S < 8:
        # Tiny-sequence fallback: single full-extent block (the (8,128) rule is
        # satisfied via the "equals full array dim" exception). Slicing S*D
        # elements here is negligible.
        pe_in, ts, grid_s = pe2d[:S], S, 1
    else:
        pe_in = pe2d
        ts = tile_s if tile_s is not None else _choose_tile_s(S, B, D, x.dtype)
        assert ts % 8 == 0, "tile_s must be a multiple of 8"
        grid_s = pl.cdiv(S, ts)

    extra = {"input_output_aliases": {0: 0}} if donate_x else {}

    return pl.pallas_call(
        _add_pe_kernel,
        out_shape=jax.ShapeDtypeStruct((S, B, D), x.dtype),
        grid_spec=pltpu.PrefetchScalarGridSpec(
            num_scalar_prefetch=0,
            grid=(grid_s,),
            in_specs=[
                pl.BlockSpec((ts, B, D), lambda s: (s, 0, 0)),   # x seq tile
                pl.BlockSpec((ts, D), lambda s: (s, 0)),         # pe seq tile (2-D dense)
            ],
            out_specs=pl.BlockSpec((ts, B, D), lambda s: (s, 0, 0)),
        ),
        compiler_params=pltpu.CompilerParams(
            # Independent seq tiles -> shard across both TensorCores on v7x.
            dimension_semantics=("parallel",),
            # 32 MiB scoped VMEM: covers the ~4 MiB-block double-buffer footprint
            # and raises v5e's 16 MiB default so the same tiling compiles there.
            vmem_limit_bytes=32 << 20,
        ),
        **extra,
    )(x, pe_in)


if __name__ == "__main__":
    key = jax.random.PRNGKey(0)
    max_len = 5000

    # --- Test 1: module's toy config (f32, small D -> lane-padded, documented) ---
    d_model, seq_len, batch = 32, 8, 2
    pe = make_positional_encoding(d_model, max_len, dtype=jnp.float32)     # [5000, 32]
    x = jax.random.normal(key, (seq_len, batch, d_model), dtype=jnp.float32)

    out = jax.block_until_ready(positional_encoding_forward(x, pe))
    ref = x + pe[:seq_len][:, None, :]
    assert out.shape == (seq_len, batch, d_model)
    assert jnp.allclose(out, ref, atol=1e-6), "f32 mismatch vs reference"

    # --- Test 2: multi-tile grid + bf16 path, lane-dense D=128 ---
    d2, s2, b2 = 128, 64, 4
    pe2 = make_positional_encoding(d2, max_len, dtype=jnp.bfloat16)
    x2 = jax.random.normal(jax.random.PRNGKey(1), (s2, b2, d2), dtype=jnp.bfloat16)

    out2 = jax.block_until_ready(positional_encoding_forward(x2, pe2, tile_s=16))
    ref2 = x2 + pe2[:s2][:, None, :]
    assert out2.shape == (s2, b2, d2)
    assert jnp.allclose(out2.astype(jnp.float32), ref2.astype(jnp.float32),
                        atol=1e-2), "bf16 mismatch vs reference"

    # --- Test 3: automatic padded-dim tile chooser (grid split across seq) ---
    d3, s3, b3 = 256, 256, 8
    pe3 = make_positional_encoding(d3, max_len, dtype=jnp.float32)
    x3 = jax.random.normal(jax.random.PRNGKey(2), (s3, b3, d3), dtype=jnp.float32)

    out3 = jax.block_until_ready(positional_encoding_forward(x3, pe3))
    ref3 = x3 + pe3[:s3][:, None, :]
    assert jnp.allclose(out3, ref3, atol=1e-6), "auto-tile f32 mismatch vs reference"

    print("KERNEL_OK")
</pallas_src>

<mosaic_0001>
module attributes {stable_mosaic.version = 11 : i64} {
  func.func @_add_pe_kernel(%arg0: i32, %arg1: memref<8x2x32xf32, #tpu.memory_space<vmem>>, %arg2: memref<8x32xf32, #tpu.memory_space<vmem>>, %arg3: memref<8x2x32xf32, #tpu.memory_space<vmem>>) attributes {dimension_semantics = [#tpu.dimension_semantics<parallel>], iteration_bounds = array<i64: 1>, scalar_prefetch = 0 : i64, scratch_operands = 0 : i64, tpu.core_type = #tpu.core_type<tc>, window_params = [{transform_indices = @transform_0, window_bounds = array<i64: 8, 2, 32>}, {transform_indices = @transform_1, window_bounds = array<i64: 8, 32>}, {transform_indices = @transform_2, window_bounds = array<i64: 8, 2, 32>}]} {
    %c0 = arith.constant 0 : index
    %c0_0 = arith.constant 0 : index
    %c0_1 = arith.constant 0 : index
    %0 = vector.load %arg1[%c0, %c0_0, %c0_1] : memref<8x2x32xf32, #tpu.memory_space<vmem>>, vector<8x2x32xf32>
    %c0_2 = arith.constant 0 : index
    %c0_3 = arith.constant 0 : index
    %1 = vector.load %arg2[%c0_2, %c0_3] : memref<8x32xf32, #tpu.memory_space<vmem>>, vector<8x32xf32>
    %2 = vector.shape_cast %1 : vector<8x32xf32> to vector<8x1x32xf32>
    %3 = vector.broadcast %2 : vector<8x1x32xf32> to vector<8x2x32xf32>
    %4 = arith.addf %0, %3 : vector<8x2x32xf32>
    %c0_4 = arith.constant 0 : index
    %c0_5 = arith.constant 0 : index
    %c0_6 = arith.constant 0 : index
    %5 = vector.load %arg3[%c0_4, %c0_5, %c0_6] : memref<8x2x32xf32, #tpu.memory_space<vmem>>, vector<8x2x32xf32>
    tpu.vector_store %arg3[%c0_4, %c0_5, %c0_6], %4 {strides = array<i32>} : memref<8x2x32xf32, #tpu.memory_space<vmem>>, vector<8x2x32xf32>,
    return
  }
  func.func @transform_0(%arg0: i32) -> (i32, i32, i32) {
    %c0_i32 = arith.constant 0 : i32
    %c0_i32_0 = arith.constant 0 : i32
    %c0_i32_1 = arith.constant 0 : i32
    return %arg0, %c0_i32, %c0_i32_0 : i32, i32, i32
  }
  func.func @transform_1(%arg0: i32) -> (i32, i32) {
    %c0_i32 = arith.constant 0 : i32
    %c0_i32_0 = arith.constant 0 : i32
    return %arg0, %c0_i32 : i32, i32
  }
  func.func @transform_2(%arg0: i32) -> (i32, i32, i32) {
    %c0_i32 = arith.constant 0 : i32
    %c0_i32_0 = arith.constant 0 : i32
    %c0_i32_1 = arith.constant 0 : i32
    return %arg0, %c0_i32, %c0_i32_0 : i32, i32, i32
  }
}

</mosaic_0001>

<bundles_post_ra>
// kernel: tpu_custom_call.1
= control target key start
LH: loop header
LB: loop body
LE: loop exit
PB: predicated region body
PF: predicated region fallthrough
CT: control target
= control target key end

     0   :  { %v26_v1 = vlaneseq  ;;  %v172_v2 = vmov 1966171168   ;;  %s238_s0 = inlined_call_operand.vmem [shape: f32[8,2,32], index: 0, kind: input, shape index: {}]   ;;  %s239_s1 = inlined_call_operand.vmem [shape: f32[5000,32], index: 1, kind: input, shape index: {}]   ;;  %s240_s2 = inlined_call_operand.hbm [shape: f32[8,2,32], index: 2, kind: output, shape index: {}]  }
   0x1   :  { %v20_v0 = vld [vmem:[%s239_s1] sm:$0xff]  ;;  %v24_v3 = vunpack.c.l.s4 %v172_v2 }
   0x2   :  { %v27_v4 = vshrl.u32 %v26_v1, 7  ;;  %v22_v6 = vcombine.high %v20_v0, %v20_v0 }
   0x3   :  { %v25_v5 = vunpack.c.0.s8 %v24_v3 }
   0x4   :  { %7 = vsyncpa [#allocation3], 0  ;;  %v73_v9 = vsub.s32 0, %v27_v4  ;;  %v12_v15 = vld [vmem:[%s238_s0] sm:$0x3]  ;;  %vm119_vm0 = vcmask 254976  }
   0x5   :  { %v28_v7 = vsub.s32 %v25_v5, %v27_v4  ;;  %v16_v19 = vld [vmem:[%s238_s0 + $0x8] sm:$0x3]  ;;  %v13_v21 = vld [vmem:[%s238_s0 + $0x2] sm:$0x3]  ;;  %v14_v22 = vld [vmem:[%s238_s0 + $0x4] sm:$0x3] }
   0x6   :  { %v17_v29 = vld [vmem:[%s238_s0 + $0xa] sm:$0x3]  ;;  %v18_v30 = vld [vmem:[%s238_s0 + $0xc] sm:$0x3]  ;;  %v15_v31 = vld [vmem:[%s238_s0 + $0x6] sm:$0x3] }
   0x7   :  { %v29_v8 = vrot.slane %v20_v0, %v28_v7  ;;  %v36_v10 = vrot.slane %v22_v6, %v28_v7  ;;  %v19_v39 = vld [vmem:[%s238_s0 + $0xe] sm:$0x3]  ;;  %s173_s26 = smov [#allocation2]  }
   0x8   :  { %s133_s27 = sshll.u32 %s173_s26, 4  ;;  %s134_s27 = int_to_ptr.vmem [resolvable:$true] %s133_s27 }
   0x9   :  { %v45_v11 = vrot.slane %v29_v8, %v28_v7  ;;  %v37_v12 = vcombine.high %v29_v8, %v29_v8  ;;  %v52_v13 = vrot.slane %v36_v10, %v28_v7  ;;  %v38_v14 = vcombine.high %v36_v10, %v36_v10  ;;  %s148_s0 = scalar_lea.vmem %s134_s27, 256  ;;  %p153_p1 = scmp.lt.s32.totalorder %s134_s27, %s134_s27 }
   0xa   :  { %p149_p0 = scmp.ne.s32.totalorder %s134_s27, %s148_s0  ;;  %p154_p2 = scmp.lt.s32.totalorder %s148_s0, %s148_s0 }
   0xb   :  { %v74_v16 = vrot.slane %v45_v11, %v73_v9  ;;  %v59_v17 = vrot.slane %v37_v12, %v28_v7  ;;  %v67_v18 = vcombine.high %v45_v11, %v45_v11  ;;  %v90_v20 = vrot.slane %v52_v13, %v73_v9 }
   0xc   :  { %v66_v23 = vrot.slane %v38_v14, %v28_v7  ;;  %v68_v24 = vcombine.high %v52_v13, %v52_v13  ;;  %p155_p3 = por %p154_p2, %p153_p1 }
   0xd   :  { %v111_v25 = vadd.f32 %v74_v16, %v12_v15  ;;  %v78_v26 = vrot.slane %v59_v17, %v73_v9  ;;  %v82_v27 = vrot.slane %v67_v18, %v73_v9  ;;  %v69_v28 = vcombine.high %v59_v17, %v59_v17 }
   0xe   :  { %v115_v32 = vadd.f32 %v90_v20, %v16_v19  ;;  %v94_v33 = vrot.slane %v66_v23, %v73_v9  ;;  %v98_v34 = vrot.slane %v68_v24, %v73_v9  ;;  %v70_v35 = vcombine.high %v66_v23, %v66_v23  ;;  %p156_p4 = pnand %p155_p3, %p149_p0 }
   0xf   :  { %120 = vst.msk [vmem:[#allocation2] sm:$0x3] %vm119_vm0, %v111_v25  ;;  %v112_v36 = vadd.f32 %v78_v26, %v13_v21  ;;  %v113_v37 = vadd.f32 %v82_v27, %v14_v22  ;;  %v86_v38 = vrot.slane %v69_v28, %v73_v9 }
  0x10   :  { %124 = vst.msk [vmem:[#allocation2 + $0x8] sm:$0x3] %vm119_vm0, %v115_v32  ;;  %v116_v40 = vadd.f32 %v94_v33, %v17_v29  ;;  %v117_v41 = vadd.f32 %v98_v34, %v18_v30  ;;  %v102_v42 = vrot.slane %v70_v35, %v73_v9 }
  0x11   :  { %121 = vst.msk [vmem:[#allocation2 + $0x2] sm:$0x3] %vm119_vm0, %v112_v36  ;;  %122 = vst.msk [vmem:[#allocation2 + $0x4] sm:$0x3] %vm119_vm0, %v113_v37  ;;  %v114_v43 = vadd.f32 %v86_v38, %v15_v31 }
  0x12   :  { %125 = vst.msk [vmem:[#allocation2 + $0xa] sm:$0x3] %vm119_vm0, %v116_v40  ;;  %126 = vst.msk [vmem:[#allocation2 + $0xc] sm:$0x3] %vm119_vm0, %v117_v41  ;;  %v118_v44 = vadd.f32 %v102_v42, %v19_v39 }
  0x13   :  { %123 = vst.msk [vmem:[#allocation2 + $0x6] sm:$0x3] %vm119_vm0, %v114_v43 }
  0x14   :  { %127 = vst.msk [vmem:[#allocation2 + $0xe] sm:$0x3] %vm119_vm0, %v118_v44 }
  0x15   :  { %159 = shalt.err (!%p156_p4)
}
  0x16   :  { %s160_s30 = scalar_lea.hbm %s240_s2, 256 }
  0x17   :  { %p161_p5 = scmp.ne.s32.totalorder %s240_s2, %s160_s30  ;;  %p164_p6 = scmp.lt.u32.totalorder %s160_s30, %s240_s2 }
  0x19   :  { %p166_p7 = pnand %p164_p6, %p161_p5 }
  0x1b   :  { %169 = shalt.err (!%p166_p7)
}
  0x1c   :  { %s174_s7 = smov 32   ;;  %s175_s8 = smov 2  }
  0x1d   :  { %139 = dma.vmem_to_hbm [thread:$0]  %s134_s27, 256, %s240_s2, [#allocation3], %s174_s7, %s174_s7, %s175_s8  }
  0x1e   :  { %170 = dma.done.wait [#allocation3], 256  }
  0x1f   :  { %171 = vsyncadd [#allocation3], 4294967040 }
  0x20   :  { %143 = vsyncpa [#allocation3], 1 }

</bundles_post_ra>
